<compile_context>
chip_gen: v6e
topology: v6e:2x2x1
jax: 0.10.0
libtpu: 0.0.40
codegen_flags: <defaults>
</compile_context>

<pallas_src>
import functools

import jax
import jax.numpy as jnp
from jax.experimental import pallas as pl
from jax.experimental.pallas import tpu as pltpu


def _cdiv(a, b):
    return -(-a // b)


def _round_up(a, b):
    return _cdiv(a, b) * b


def _chip_info():
    """Return (is_v7x, has_two_tensorcores); conservative on unknown kinds."""
    try:
        kind = jax.devices()[0].device_kind.lower()
    except Exception:
        kind = ""
    is_v7 = "v7" in kind
    single_tc = ("lite" in kind) or ("v5e" in kind) or ("v6" in kind)
    multi_tc = (is_v7 or ("v4" in kind) or ("v5p" in kind)) and not single_tc
    return is_v7, multi_tc


def _dice_partial_kernel(pred_ref, targ_ref, out_ref, *, rows, nblk, tb, needs_mask):
    """Accumulate [sum(p*t), sum(p), sum(t)] over rows into out_ref (1,3,hw_tile)."""
    i = pl.program_id(2)  # innermost reduction axis over row-blocks

    @pl.when(i == 0)
    def _():
        out_ref[...] = jnp.zeros_like(out_ref)

    p = pred_ref[...].astype(jnp.float32)
    t = targ_ref[...].astype(jnp.float32)

    if needs_mask:
        # Rows past `rows` come from an out-of-bounds (unpadded) block read and
        # hold unspecified data; zero them so they contribute nothing.
        start = (pl.program_id(0) * nblk + i) * tb
        row_id = jax.lax.broadcasted_iota(jnp.int32, p.shape, 0)
        valid = row_id < (rows - start)
        p = jnp.where(valid, p, 0.0)
        t = jnp.where(valid, t, 0.0)

    inter = jnp.sum(p * t, axis=0, keepdims=True)   # (1, hw_tile)
    psum = jnp.sum(p, axis=0, keepdims=True)
    tsum = jnp.sum(t, axis=0, keepdims=True)
    # One fused accumulator update instead of three single-sublane RMWs.
    out_ref[...] += jnp.concatenate([inter, psum, tsum], axis=0)[None]


def dice_loss(pred, target, smooth=1.0):
    """Pallas TPU dice loss. pred/target: (N, C, H, W) arrays -> f32 scalar."""
    assert pred.shape == target.shape
    N, C, H, W = pred.shape
    rows, hw = N * C, H * W

    pred2 = pred.reshape(rows, hw)
    targ2 = target.reshape(rows, hw)

    itemsize_p = jnp.dtype(pred2.dtype).itemsize
    itemsize_t = jnp.dtype(targ2.dtype).itemsize
    itemsize = max(itemsize_p, itemsize_t)                 # block-byte budgeting
    sub = {1: 32, 2: 16}.get(min(itemsize_p, itemsize_t), 8)  # sublane packing

    is_v7, multi_tc = _chip_info()
    num_splits = 2 if (multi_tc and rows >= 2 * sub) else 1
    target_block_bytes = (4 if is_v7 else 2) * 1024 * 1024

    row_bytes = hw * itemsize
    if row_bytes * sub <= target_block_bytes:
        # Full spatial extent fits a lane-dense block at >= `sub` rows.
        hw_tile, n_hw = hw, 1
        tb_cap = max(sub, (target_block_bytes // row_bytes) // sub * sub)
        tb = min(tb_cap, _round_up(_cdiv(rows, num_splits), sub))
    else:
        # Very wide rows (large H*W): tile the lane dimension (multiple of 128)
        # so blocks stay near the ~2-4 MiB knee and inside VMEM on every chip.
        tb = sub
        hw_tile = max(128, (target_block_bytes // (sub * itemsize)) // 128 * 128)
        hw_tile = min(hw_tile, _round_up(hw, 128))
        n_hw = _cdiv(hw, hw_tile)

    nblk = _cdiv(rows, num_splits * tb)
    needs_mask = (num_splits * nblk * tb != rows)

    # VMEM: 2 inputs x 2 pipeline buffers + double-buffered (1,3,hw_tile) out,
    # with ~1.5x headroom (no blanket 32/48 MiB floor/ceiling).
    block_bytes = tb * hw_tile * itemsize
    need = 2 * 2 * block_bytes + 2 * 3 * hw_tile * 4
    vmem_limit = int(min(max(int(need * 1.5) + (1 << 20), 16 << 20), 44 << 20))

    # Only a real multi-TensorCore split uses CORE_PARALLEL; plain "parallel"
    # does not reliably shard across cores.
    core_parallel = getattr(pltpu, "CORE_PARALLEL", "parallel")
    split_sem = core_parallel if num_splits > 1 else "arbitrary"

    kernel = functools.partial(_dice_partial_kernel, rows=rows, nblk=nblk, tb=tb,
                               needs_mask=needs_mask)
    row_map = lambda c, j, i: (c * nblk + i, j)

    partials = pl.pallas_call(
        kernel,
        out_shape=jax.ShapeDtypeStruct((num_splits, 3, hw), jnp.float32),
        grid=(num_splits, n_hw, nblk),
        in_specs=[
            pl.BlockSpec((tb, hw_tile), row_map),
            pl.BlockSpec((tb, hw_tile), row_map),
        ],
        out_specs=pl.BlockSpec((1, 3, hw_tile), lambda c, j, i: (c, 0, j)),
        compiler_params=pltpu.CompilerParams(
            dimension_semantics=(split_sem, "parallel", "arbitrary"),
            vmem_limit_bytes=vmem_limit),
    )(pred2, targ2)

    # Tiny finalize in plain JAX: combine per-core partials, dice term, mean
    # over exactly H*W logical spatial positions (lanes beyond hw never land
    # in the output array, rows beyond N*C are masked in-kernel).
    inter = partials[:, 0, :].sum(axis=0)
    psum = partials[:, 1, :].sum(axis=0)
    tsum = partials[:, 2, :].sum(axis=0)
    loss = 1.0 - (2.0 * inter + smooth) / (psum + tsum + smooth)
    return loss.mean()


def _dice_loss_ref(pred, target, smooth=1.0):
    intersection = (pred * target).sum(axis=0).sum(axis=0)
    loss = 1.0 - (2.0 * intersection + smooth) / (
        pred.sum(axis=0).sum(axis=0) + target.sum(axis=0).sum(axis=0) + smooth)
    return loss.mean()


if __name__ == "__main__":
    key = jax.random.PRNGKey(0)
    k1, k2 = jax.random.split(key)
    # Small segmentation-style inputs.
    pred = jax.random.uniform(k1, (2, 4, 16, 16), dtype=jnp.float32)
    target = (jax.random.uniform(k2, (2, 4, 16, 16)) > 0.5).astype(jnp.float32)

    out = jax.block_until_ready(dice_loss(pred, target, smooth=1.0))
    ref = _dice_loss_ref(pred, target, smooth=1.0)
    assert jnp.allclose(out, ref, atol=1e-5, rtol=1e-5), (out, ref)

    print("KERNEL_OK")
</pallas_src>

<mosaic_0001>
module attributes {stable_mosaic.version = 11 : i64} {
  func.func @_dice_partial_kernel(%arg0: i32, %arg1: i32, %arg2: i32, %arg3: memref<8x256xf32, #tpu.memory_space<vmem>>, %arg4: memref<8x256xf32, #tpu.memory_space<vmem>>, %arg5: memref<1x3x256xf32, #tpu.memory_space<vmem>>) attributes {dimension_semantics = [#tpu.dimension_semantics<arbitrary>, #tpu.dimension_semantics<parallel>, #tpu.dimension_semantics<arbitrary>], iteration_bounds = array<i64: 1, 1, 1>, scalar_prefetch = 0 : i64, scratch_operands = 0 : i64, tpu.core_type = #tpu.core_type<tc>, window_params = [{transform_indices = @transform_0, window_bounds = array<i64: 8, 256>}, {transform_indices = @transform_1, window_bounds = array<i64: 8, 256>}, {transform_indices = @transform_2, window_bounds = array<i64: 1, 3, 256>}]} {
    %c0_i32 = arith.constant 0 : i32
    %0 = arith.cmpi eq, %arg2, %c0_i32 : i32
    %1 = arith.extui %0 : i1 to i32
    %c0_i32_0 = arith.constant 0 : i32
    %2 = arith.cmpi ne, %1, %c0_i32_0 : i32
    scf.if %2 {
      %cst_12 = arith.constant 0.000000e+00 : f32
      %17 = vector.broadcast %cst_12 : f32 to vector<1x3x256xf32>
      %c0_13 = arith.constant 0 : index
      %c0_14 = arith.constant 0 : index
      %c0_15 = arith.constant 0 : index
      %18 = vector.load %arg5[%c0_13, %c0_14, %c0_15] : memref<1x3x256xf32, #tpu.memory_space<vmem>>, vector<1x3x256xf32>
      tpu.vector_store %arg5[%c0_13, %c0_14, %c0_15], %17 {strides = array<i32>} : memref<1x3x256xf32, #tpu.memory_space<vmem>>, vector<1x3x256xf32>,
    } else {
    }
    %c0 = arith.constant 0 : index
    %c0_1 = arith.constant 0 : index
    %3 = vector.load %arg3[%c0, %c0_1] : memref<8x256xf32, #tpu.memory_space<vmem>>, vector<8x256xf32>
    %c0_2 = arith.constant 0 : index
    %c0_3 = arith.constant 0 : index
    %4 = vector.load %arg4[%c0_2, %c0_3] : memref<8x256xf32, #tpu.memory_space<vmem>>, vector<8x256xf32>
    %5 = arith.mulf %3, %4 : vector<8x256xf32>
    %cst = arith.constant dense<0.000000e+00> : vector<256xf32>
    %6 = vector.multi_reduction <add>, %5, %cst [0] : vector<8x256xf32> to vector<256xf32>
    %7 = vector.shape_cast %6 : vector<256xf32> to vector<1x256xf32>
    %cst_4 = arith.constant dense<0.000000e+00> : vector<256xf32>
    %8 = vector.multi_reduction <add>, %3, %cst_4 [0] : vector<8x256xf32> to vector<256xf32>
    %9 = vector.shape_cast %8 : vector<256xf32> to vector<1x256xf32>
    %cst_5 = arith.constant dense<0.000000e+00> : vector<256xf32>
    %10 = vector.multi_reduction <add>, %4, %cst_5 [0] : vector<8x256xf32> to vector<256xf32>
    %11 = vector.shape_cast %10 : vector<256xf32> to vector<1x256xf32>
    %c0_6 = arith.constant 0 : index
    %c0_7 = arith.constant 0 : index
    %c0_8 = arith.constant 0 : index
    %12 = vector.load %arg5[%c0_6, %c0_7, %c0_8] : memref<1x3x256xf32, #tpu.memory_space<vmem>>, vector<1x3x256xf32>
    %13 = tpu.concatenate %7, %9, %11 in 0 : vector<1x256xf32>, vector<1x256xf32>, vector<1x256xf32> -> vector<3x256xf32>
    %14 = vector.shape_cast %13 : vector<3x256xf32> to vector<1x3x256xf32>
    %15 = arith.addf %12, %14 : vector<1x3x256xf32>
    %c0_9 = arith.constant 0 : index
    %c0_10 = arith.constant 0 : index
    %c0_11 = arith.constant 0 : index
    %16 = vector.load %arg5[%c0_9, %c0_10, %c0_11] : memref<1x3x256xf32, #tpu.memory_space<vmem>>, vector<1x3x256xf32>
    tpu.vector_store %arg5[%c0_9, %c0_10, %c0_11], %15 {strides = array<i32>} : memref<1x3x256xf32, #tpu.memory_space<vmem>>, vector<1x3x256xf32>,
    return
  }
  func.func @transform_0(%arg0: i32, %arg1: i32, %arg2: i32) -> (i32, i32) {
    %c1_i32 = arith.constant 1 : i32
    %0 = arith.muli %arg0, %c1_i32 : i32
    %1 = arith.addi %0, %arg2 : i32
    %c0_i32 = arith.constant 0 : i32
    return %1, %arg1 : i32, i32
  }
  func.func @transform_1(%arg0: i32, %arg1: i32, %arg2: i32) -> (i32, i32) {
    %c1_i32 = arith.constant 1 : i32
    %0 = arith.muli %arg0, %c1_i32 : i32
    %1 = arith.addi %0, %arg2 : i32
    %c0_i32 = arith.constant 0 : i32
    return %1, %arg1 : i32, i32
  }
  func.func @transform_2(%arg0: i32, %arg1: i32, %arg2: i32) -> (i32, i32, i32) {
    %c0_i32 = arith.constant 0 : i32
    %c0_i32_0 = arith.constant 0 : i32
    return %arg0, %c0_i32, %arg1 : i32, i32, i32
  }
}

</mosaic_0001>

<bundles_post_ra>
// kernel: tpu_custom_call.1
= control target key start
LH: loop header
LB: loop body
LE: loop exit
PB: predicated region body
PF: predicated region fallthrough
CT: control target
= control target key end

     0   :  { %7 = vsyncpa [#allocation3], 0  ;;  %s191_s0 = inlined_call_operand.hbm [shape: f32[8,256], index: 0, kind: input, shape index: {}]   ;;  %s192_s1 = inlined_call_operand.hbm [shape: f32[8,256], index: 1, kind: input, shape index: {}]   ;;  %s193_s2 = inlined_call_operand.vmem [shape: f32[1,3,256], index: 2, kind: output, shape index: {}]  }
   0x1   :  { %8 = vsyncpa [#allocation5], 0  ;;  %s158_s9 = smov [#allocation2]   ;;  %s159_s11 = smov [#allocation4]  }
   0x2   :  { %s19_s10 = sshll.u32 %s158_s9, 4  ;;  %s33_s12 = sshll.u32 %s159_s11, 4  ;;  %s20_s10 = int_to_ptr.vmem [resolvable:$true] %s19_s10  ;;  %s34_s12 = int_to_ptr.vmem [resolvable:$true] %s33_s12 }
   0x3   :  { %s122_s13 = scalar_lea.vmem %s20_s10, 256  ;;  %p127_p1 = scmp.lt.s32.totalorder %s20_s10, %s20_s10 }
   0x4   :  { %p123_p0 = scmp.ne.s32.totalorder %s20_s10, %s122_s13  ;;  %p128_p2 = scmp.lt.s32.totalorder %s122_s13, %s122_s13 }
   0x6   :  { %p129_p3 = por %p128_p2, %p127_p1 }
   0x8   :  { %p130_p4 = pnand %p129_p3, %p123_p0 }
   0xa   :  { %133 = shalt.err (!%p130_p4)
}
   0xb   :  { %22 = dma.hbm_to_vmem [thread:$0]  %s191_s0, 256, %s20_s10, [#allocation3]  }
   0xc   :  { %s142_s16 = scalar_lea.vmem %s34_s12, 256  ;;  %p147_p6 = scmp.lt.s32.totalorder %s34_s12, %s34_s12 }
   0xd   :  { %p143_p5 = scmp.ne.s32.totalorder %s34_s12, %s142_s16  ;;  %p148_p7 = scmp.lt.s32.totalorder %s142_s16, %s142_s16 }
   0xf   :  { %p149_p8 = por %p148_p7, %p147_p6 }
  0x11   :  { %p150_p9 = pnand %p149_p8, %p143_p5 }
  0x13   :  { %153 = shalt.err (!%p150_p9)
}
  0x14   :  { %36 = dma.hbm_to_vmem [thread:$0]  %s192_s1, 256, %s34_s12, [#allocation5]  }
  0x15   :  { %154 = dma.done.wait [#allocation3], 256  }
  0x16   :  { %155 = vsyncadd [#allocation3], 4294967040 }
  0x17   :  { %156 = dma.done.wait [#allocation5], 256  }
  0x18   :  { %157 = vsyncadd [#allocation5], 4294967040  ;;  %v160_v0 = vmov 0.0   ;;  %v50_v1 = vld [vmem:[#allocation2] sm:$0xff]  ;;  %v51_v2 = vld [vmem:[#allocation2 + $0x8] sm:$0xff]  ;;  %vm93_vm0 = vcmask 1040384  }
  0x19   :  { %49 = vst [vmem:[%s193_s2] sm:$0x77] %v160_v0  ;;  %v52_v3 = vld [vmem:[#allocation4] sm:$0xff]  ;;  %v53_v4 = vld [vmem:[#allocation4 + $0x8] sm:$0xff]  ;;  %v68_v6 = vrot.slane %v50_v1, 4  ;;  %v74_v7 = vrot.slane %v51_v2, 4  ;;  %vm96_vm1 = vcmask 1041408  }
  0x1a   :  { %v54_v5 = vmul.f32 %v52_v3, %v50_v1  ;;  %v80_v8 = vrot.slane %v52_v3, 4  ;;  %v55_v9 = vmul.f32 %v53_v4, %v51_v2  ;;  %v86_v10 = vrot.slane %v53_v4, 4 }
  0x1b   :  { %v69_v12 = vadd.f32 %v68_v6, %v50_v1  ;;  %v75_v13 = vadd.f32 %v74_v7, %v51_v2 }
  0x1c   :  { %v56_v11 = vrot.slane %v54_v5, 4  ;;  %v81_v14 = vadd.f32 %v80_v8, %v52_v3  ;;  %v62_v15 = vrot.slane %v55_v9, 4  ;;  %v87_v16 = vadd.f32 %v86_v10, %v53_v4 }
  0x1d   :  { %v70_v18 = vrot.slane %v69_v12, 2  ;;  %v76_v19 = vrot.slane %v75_v13, 2 }
  0x1e   :  { %v57_v17 = vadd.f32 %v56_v11, %v54_v5  ;;  %v82_v20 = vrot.slane %v81_v14, 2  ;;  %v63_v21 = vadd.f32 %v62_v15, %v55_v9  ;;  %v88_v22 = vrot.slane %v87_v16, 2 }
  0x1f   :  { %v71_v24 = vadd.f32 %v70_v18, %v69_v12  ;;  %v77_v25 = vadd.f32 %v76_v19, %v75_v13 }
  0x20   :  { %v58_v23 = vrot.slane %v57_v17, 2  ;;  %v83_v26 = vadd.f32 %v82_v20, %v81_v14  ;;  %v64_v27 = vrot.slane %v63_v21, 2  ;;  %v89_v28 = vadd.f32 %v88_v22, %v87_v16  ;;  %v92_v46 = vld [vmem:[%s193_s2] sm:$0x77] }
  0x21   :  { %v72_v30 = vrot.slane %v71_v24, 1  ;;  %v78_v31 = vrot.slane %v77_v25, 1 }
  0x22   :  { %v59_v29 = vadd.f32 %v58_v23, %v57_v17  ;;  %v84_v32 = vrot.slane %v83_v26, 1  ;;  %v65_v33 = vadd.f32 %v64_v27, %v63_v21  ;;  %v90_v34 = vrot.slane %v89_v28, 1 }
  0x23   :  { %v73_v36 = vadd.f32 %v72_v30, %v71_v24  ;;  %v79_v38 = vadd.f32 %v78_v31, %v77_v25 }
  0x24   :  { %v60_v35 = vrot.slane %v59_v29, 1  ;;  %v66_v37 = vrot.slane %v65_v33, 1  ;;  %v85_v39 = vadd.f32 %v84_v32, %v83_v26  ;;  %v91_v41 = vadd.f32 %v90_v34, %v89_v28 }
  0x26   :  { %v61_v40 = vadd.f32 %v60_v35, %v59_v29  ;;  %v67_v42 = vadd.f32 %v66_v37, %v65_v33 }
  0x28   :  { %v94_v43 = vsel %vm93_vm0, %v61_v40, %v73_v36  ;;  %v95_v44 = vsel %vm93_vm0, %v67_v42, %v79_v38 }
  0x29   :  { %v97_v45 = vsel %vm96_vm1, %v94_v43, %v85_v39  ;;  %v98_v47 = vsel %vm96_vm1, %v95_v44, %v91_v41 }
  0x2a   :  { %v101_v48 = vcombine.low %v97_v45, %v98_v47 }
  0x2c   :  { %v103_v49 = vadd.f32 %v101_v48, %v92_v46 }
  0x2e   :  { %104 = vst [vmem:[%s193_s2] sm:$0x77] %v103_v49 }
  0x2f   :  { %109 = vsyncpa [#allocation3], 1 }
  0x30   :  { %110 = vsyncpa [#allocation5], 1 }

</bundles_post_ra>
